<compile_context>
chip_gen: v7x
topology: tpu7x:2x2x1
jax: 0.10.0
libtpu: 0.0.40
codegen_flags: <defaults>
</compile_context>

<pallas_src>
import functools
from typing import Dict, NamedTuple

import numpy as np
import jax
import jax.numpy as jnp
from jax.experimental import pallas as pl
from jax.experimental.pallas import tpu as pltpu


# ----------------------------------------------------------------------------
# NestedTensor stand-in
# ----------------------------------------------------------------------------
class NestedTensor(NamedTuple):
    tensors: jax.Array  # (N, C, H, W) float32
    mask: jax.Array     # (N, H, W) bool


_LANE = 128
_TARGET_TILE_M = 1024   # per-step overhead amortizes above ~512 rows
_TARGET_TILE_K = 512    # K tile (multiple of 256: matches 2x256 MXU on v6e/v7x)
_SPLIT_MIN_M = 256      # split M into >=2 tiles above this (v7x megacore)


def _round_up(x: int, m: int) -> int:
    return (x + m - 1) // m * m


def _padded_k(k: int) -> int:
    """Lane-dense K; if K exceeds one K tile, make it a multiple of the tile."""
    kp = _round_up(k, _LANE)
    if kp > _TARGET_TILE_K:
        kp = _round_up(kp, _TARGET_TILE_K)
    return kp


def _choose_tile_m(m: int) -> int:
    if m > _TARGET_TILE_M:
        return _TARGET_TILE_M
    if m >= _SPLIT_MIN_M:
        # >= 2 M tiles so the "parallel" M axis can shard across v7x's two TCs;
        # keep the tile a multiple of 16 (bf16 sublane packing).
        return min(_round_up(-(-m // 2), 16), m)
    return m


@functools.lru_cache(maxsize=None)
def _vmem_cap_bytes() -> int:
    """Generation-aware VMEM ceiling (~85% of physical), with a safe fallback."""
    cap = 64 << 20
    try:
        info = pltpu.get_tpu_info()
        cap = int(getattr(info, "vmem_capacity_bytes", cap))
    except Exception:
        pass
    return max(int(cap * 0.85), 32 << 20)


# ----------------------------------------------------------------------------
# Pallas kernel: fused bf16 GEMM + bias + ReLU with K-axis accumulation
# ----------------------------------------------------------------------------
def _gemm_bias_relu_kernel(x_ref, w_ref, b_ref, o_ref, acc_ref, *, relu: bool):
    k = pl.program_id(1)

    @pl.when(k == 0)
    def _init():
        acc_ref[...] = jnp.zeros_like(acc_ref)

    # bf16 x bf16 -> f32 MXU accumulate.
    acc_ref[...] += jnp.dot(x_ref[...], w_ref[...],
                            preferred_element_type=jnp.float32)

    @pl.when(k == pl.num_programs(1) - 1)
    def _finalize():
        acc = acc_ref[...] + b_ref[...]       # bias once, on the f32 accumulator
        if relu:
            acc = jnp.maximum(acc, 0.0)
        o_ref[...] = acc.astype(o_ref.dtype)  # bf16 store (lane-dense cout_p)


def _im2col(x_nhwc, kh, kw, stride, pad):
    """Plain-JAX glue (fused under jit): patches -> (N*Ho*Wo, kh*kw*Cin)."""
    N, H, W, C = x_nhwc.shape
    xp = jnp.pad(x_nhwc, ((0, 0), (pad, pad), (pad, pad), (0, 0)))
    Ho = (H + 2 * pad - kh) // stride + 1
    Wo = (W + 2 * pad - kw) // stride + 1
    cols = []
    for i in range(kh):
        for j in range(kw):
            cols.append(xp[:, i:i + stride * Ho:stride, j:j + stride * Wo:stride, :])
    col = jnp.concatenate(cols, axis=-1)               # (N, Ho, Wo, kh*kw*C)
    return col.reshape(N * Ho * Wo, kh * kw * C), Ho, Wo


def conv3x3_s2_relu(x_nhwc, w2, b2, cout, *, relu=True):
    """3x3 stride-2 pad-1 conv + bias + ReLU.  w2/b2 are pre-padded/pre-cast.

    w2: (K_pad, cout_p) bf16,  b2: (1, cout_p) f32.  Returns NHWC bf16.
    """
    N = x_nhwc.shape[0]
    K_pad, cout_p = w2.shape

    col, Ho, Wo = _im2col(x_nhwc.astype(jnp.bfloat16), 3, 3, stride=2, pad=1)
    M, K = col.shape
    if K_pad != K:
        # Zero-pad K to the lane-dense / tile-divisible width (numerically free).
        col = jnp.pad(col, ((0, 0), (0, K_pad - K)))

    tile_m = _choose_tile_m(M)
    tile_k = min(K_pad, _TARGET_TILE_K)        # K_pad is a multiple of tile_k
    grid_m = pl.cdiv(M, tile_m)
    grid_k = K_pad // tile_k

    # VMEM budget: BOTH pipeline buffers for every input/output block + f32
    # accumulator scratch + headroom.  Capped generation-aware (v7x 64 MiB).
    vmem_bytes = (2 * tile_m * tile_k * 2      # activation tile, bf16, x2 bufs
                  + 2 * tile_k * cout_p * 2    # weight tile, bf16, x2 bufs
                  + 2 * cout_p * 4             # bias row, f32, x2 bufs
                  + 2 * tile_m * cout_p * 2    # output tile, bf16, x2 bufs
                  + tile_m * cout_p * 4        # f32 accumulator scratch
                  + (2 << 20))                 # headroom
    vmem_limit = int(min(max(vmem_bytes, 16 << 20), _vmem_cap_bytes()))

    cost = pl.CostEstimate(
        flops=2 * M * K_pad * cout_p,
        transcendentals=0,
        bytes_accessed=(M * K_pad * 2 + K_pad * cout_p * 2
                        + cout_p * 4 + M * cout_p * 2))

    out = pl.pallas_call(
        functools.partial(_gemm_bias_relu_kernel, relu=relu),
        out_shape=jax.ShapeDtypeStruct((M, cout_p), jnp.bfloat16),
        grid=(grid_m, grid_k),
        in_specs=[
            pl.BlockSpec((tile_m, tile_k), lambda i, k: (i, k)),   # activations
            pl.BlockSpec((tile_k, cout_p), lambda i, k: (k, 0)),   # weights
            pl.BlockSpec((1, cout_p), lambda i, k: (0, 0)),        # bias row
        ],
        out_specs=pl.BlockSpec((tile_m, cout_p), lambda i, k: (i, 0)),
        scratch_shapes=[pltpu.VMEM((tile_m, cout_p), jnp.float32)],
        compiler_params=pltpu.CompilerParams(
            dimension_semantics=("parallel", "arbitrary"),  # M shards across TCs
            vmem_limit_bytes=vmem_limit),
        cost_estimate=cost,
    )(col, w2, b2)

    return out[:, :cout].reshape(N, Ho, Wo, cout)


# ----------------------------------------------------------------------------
# Mask nearest-neighbor resize == pure index gather (matches F.interpolate
# mode='nearest': src_idx = floor(dst_idx * in / out)).  Plain JAX — outputs
# are tiny (down to 2x2), a kernel is pure overhead.
# ----------------------------------------------------------------------------
def interpolate_mask_nearest(mask_bool, Ho, Wo):
    N, H, W = mask_bool.shape
    rows = (np.arange(Ho) * H) // Ho
    cols = (np.arange(Wo) * W) // Wo
    return mask_bool[:, rows][:, :, cols]          # stays bool, as torch .to(bool)


# ----------------------------------------------------------------------------
# jitted forward body
# ----------------------------------------------------------------------------
def _backbone_forward(params, tensors_nchw, mask, *, stage_couts,
                      return_interm_layers):
    # NCHW -> NHWC once at the boundary; features stay NHWC bf16 internally.
    x = jnp.transpose(tensors_nchw, (0, 2, 3, 1))
    feats = []
    for (w2, b2), cout in zip(params, stage_couts):   # layer1..layer4 stand-ins
        x = conv3x3_s2_relu(x, w2, b2, cout, relu=True)
        feats.append(x)

    if return_interm_layers:
        xs = {str(i): f for i, f in enumerate(feats)}
    else:
        xs = {"0": feats[-1]}

    out: Dict[str, NestedTensor] = {}
    for name, f in xs.items():
        Ho, Wo = f.shape[1], f.shape[2]
        m = interpolate_mask_nearest(mask, Ho, Wo)
        # NCHW + f32 restored on the returned tensors (torch API fidelity).
        out[name] = NestedTensor(
            jnp.transpose(f, (0, 3, 1, 2)).astype(jnp.float32), m)
    return out


# ----------------------------------------------------------------------------
# BackboneBase equivalent
# ----------------------------------------------------------------------------
class BackboneBase:
    def __init__(self, backbone_params, train_backbone: bool,
                 num_channels: int, return_interm_layers: bool):
        # `train_backbone` only controls requires_grad in PyTorch -> no-op here.
        del train_backbone
        self.num_channels = num_channels
        self.return_interm_layers = return_interm_layers

        # Pre-pad + pre-cast weights/bias ONCE (lane-dense cout, padded K).
        prepped, couts = [], []
        for (w, b) in backbone_params:
            kh, kw, cin, cout = w.shape
            K = kh * kw * cin
            K_pad = _padded_k(K)
            cout_p = _round_up(cout, _LANE)
            w2 = jnp.zeros((K_pad, cout_p), jnp.bfloat16).at[:K, :cout].set(
                w.reshape(K, cout).astype(jnp.bfloat16))
            b2 = jnp.zeros((1, cout_p), jnp.float32).at[:, :cout].set(
                b.reshape(1, cout).astype(jnp.float32))
            prepped.append((w2, b2))
            couts.append(int(cout))
        self.params = prepped

        # One jitted forward over the whole stage chain + mask gathers.
        self._forward = jax.jit(functools.partial(
            _backbone_forward,
            stage_couts=tuple(couts),
            return_interm_layers=return_interm_layers))

    def forward(self, tensor_list: NestedTensor) -> Dict[str, NestedTensor]:
        m = tensor_list.mask
        assert m is not None
        return self._forward(self.params, tensor_list.tensors, m)

    __call__ = forward


# ----------------------------------------------------------------------------
# main
# ----------------------------------------------------------------------------
def _init_backbone_params(key, in_ch, stage_channels):
    params = []
    cin = in_ch
    for cout in stage_channels:
        key, kw_, kb_ = jax.random.split(key, 3)
        w = jax.random.normal(kw_, (3, 3, cin, cout), jnp.float32) * 0.1
        b = jax.random.normal(kb_, (cout,), jnp.float32) * 0.01
        params.append((w, b))
        cin = cout
    return params


if __name__ == "__main__":
    key = jax.random.PRNGKey(0)
    k_img, k_params = jax.random.split(key)

    # Small deterministic inputs: batch=2, channels=4, spatial=32 so the four
    # stride-2 stages produce 16, 8, 4, 2 feature maps.
    N, C, H, W = 2, 4, 32, 32
    images = jax.random.normal(k_img, (N, C, H, W), jnp.float32)

    # Padding mask (True = padded), as produced by nested_tensor_from_tensor_list.
    mask = np.zeros((N, H, W), dtype=bool)
    mask[0, :, 24:] = True      # image 0 padded on the right
    mask[1, 28:, :] = True      # image 1 padded at the bottom
    mask = jnp.asarray(mask)

    stage_channels = [8, 16, 32, 64]
    params = _init_backbone_params(k_params, C, stage_channels)

    model = BackboneBase(params, train_backbone=True,
                         num_channels=stage_channels[-1],
                         return_interm_layers=True)

    out = model(NestedTensor(images, mask))

    for name, nt in out.items():
        jax.block_until_ready(nt.tensors)
        jax.block_until_ready(nt.mask)
        # sanity: mask spatial size tracks feature spatial size, dtypes as torch
        assert nt.mask.shape == (N,) + nt.tensors.shape[-2:]
        assert nt.mask.dtype == jnp.bool_
        assert nt.tensors.dtype == jnp.float32
        assert bool(jnp.all(jnp.isfinite(nt.tensors)))

    print("KERNEL_OK")
</pallas_src>

<mosaic_0001>
module attributes {stable_mosaic.version = 11 : i64} {
  func.func @_gemm_bias_relu_kernel(%arg0: i32, %arg1: i32, %arg2: memref<256x128xbf16, #tpu.memory_space<vmem>>, %arg3: memref<128x128xbf16, #tpu.memory_space<vmem>>, %arg4: memref<1x128xf32, #tpu.memory_space<vmem>>, %arg5: memref<256x128xbf16, #tpu.memory_space<vmem>>, %arg6: memref<256x128xf32, #tpu.memory_space<vmem>>) attributes {dimension_semantics = [#tpu.dimension_semantics<parallel>, #tpu.dimension_semantics<arbitrary>], iteration_bounds = array<i64: 2, 1>, scalar_prefetch = 0 : i64, scratch_operands = 1 : i64, tpu.core_type = #tpu.core_type<tc>, window_params = [{transform_indices = @transform_0, window_bounds = array<i64: 256, 128>}, {transform_indices = @transform_1, window_bounds = array<i64: 128, 128>}, {pipeline_mode = #tpu.pipeline_mode<synchronous>, transform_indices = @transform_2, window_bounds = array<i64: 1, 128>}, {transform_indices = @transform_3, window_bounds = array<i64: 256, 128>}]} {
    %c0_i32 = arith.constant 0 : i32
    %0 = arith.cmpi eq, %arg1, %c0_i32 : i32
    %1 = arith.extui %0 : i1 to i32
    %c0_i32_0 = arith.constant 0 : i32
    %2 = arith.cmpi ne, %1, %c0_i32_0 : i32
    scf.if %2 {
      %cst_10 = arith.constant 0.000000e+00 : f32
      %12 = vector.broadcast %cst_10 : f32 to vector<256x128xf32>
      %c0_11 = arith.constant 0 : index
      %c0_12 = arith.constant 0 : index
      %13 = vector.load %arg6[%c0_11, %c0_12] : memref<256x128xf32, #tpu.memory_space<vmem>>, vector<256x128xf32>
      tpu.vector_store %arg6[%c0_11, %c0_12], %12 {strides = array<i32>} : memref<256x128xf32, #tpu.memory_space<vmem>>, vector<256x128xf32>,
    } else {
    }
    %c0 = arith.constant 0 : index
    %c0_1 = arith.constant 0 : index
    %3 = vector.load %arg6[%c0, %c0_1] : memref<256x128xf32, #tpu.memory_space<vmem>>, vector<256x128xf32>
    %c0_2 = arith.constant 0 : index
    %c0_3 = arith.constant 0 : index
    %4 = vector.load %arg2[%c0_2, %c0_3] : memref<256x128xbf16, #tpu.memory_space<vmem>>, vector<256x128xbf16>
    %c0_4 = arith.constant 0 : index
    %c0_5 = arith.constant 0 : index
    %5 = vector.load %arg3[%c0_4, %c0_5] : memref<128x128xbf16, #tpu.memory_space<vmem>>, vector<128x128xbf16>
    %cst = arith.constant dense<0.000000e+00> : vector<256x128xf32>
    %6 = tpu.matmul %4, %5, %cst {dimension_numbers = #tpu.dot_dimension_numbers<[1], [0], [0], [1], [0, 0, 1, 1], [], []>} : vector<256x128xbf16>, vector<128x128xbf16>, vector<256x128xf32> -> vector<256x128xf32>
    %7 = arith.addf %3, %6 : vector<256x128xf32>
    %c0_6 = arith.constant 0 : index
    %c0_7 = arith.constant 0 : index
    %8 = vector.load %arg6[%c0_6, %c0_7] : memref<256x128xf32, #tpu.memory_space<vmem>>, vector<256x128xf32>
    tpu.vector_store %arg6[%c0_6, %c0_7], %7 {strides = array<i32>} : memref<256x128xf32, #tpu.memory_space<vmem>>, vector<256x128xf32>,
    %c0_i32_8 = arith.constant 0 : i32
    %9 = arith.cmpi eq, %arg1, %c0_i32_8 : i32
    %10 = arith.extui %9 : i1 to i32
    %c0_i32_9 = arith.constant 0 : i32
    %11 = arith.cmpi ne, %10, %c0_i32_9 : i32
    scf.if %11 {
      %c0_10 = arith.constant 0 : index
      %c0_11 = arith.constant 0 : index
      %12 = vector.load %arg6[%c0_10, %c0_11] : memref<256x128xf32, #tpu.memory_space<vmem>>, vector<256x128xf32>
      %c0_12 = arith.constant 0 : index
      %c0_13 = arith.constant 0 : index
      %13 = vector.load %arg4[%c0_12, %c0_13] : memref<1x128xf32, #tpu.memory_space<vmem>>, vector<1x128xf32>
      %14 = vector.broadcast %13 : vector<1x128xf32> to vector<256x128xf32>
      %15 = arith.addf %12, %14 : vector<256x128xf32>
      %cst_14 = arith.constant 0.000000e+00 : f32
      %16 = vector.broadcast %cst_14 : f32 to vector<256x128xf32>
      %17 = arith.maximumf %15, %16 : vector<256x128xf32>
      %18 = arith.truncf %17 : vector<256x128xf32> to vector<256x128xbf16>
      %c0_15 = arith.constant 0 : index
      %c0_16 = arith.constant 0 : index
      %19 = vector.load %arg5[%c0_15, %c0_16] : memref<256x128xbf16, #tpu.memory_space<vmem>>, vector<256x128xbf16>
      tpu.vector_store %arg5[%c0_15, %c0_16], %18 {strides = array<i32>} : memref<256x128xbf16, #tpu.memory_space<vmem>>, vector<256x128xbf16>,
    } else {
    }
    return
  }
  func.func @transform_0(%arg0: i32, %arg1: i32) -> (i32, i32) {
    %c0_i32 = arith.constant 0 : i32
    return %arg0, %arg1 : i32, i32
  }
  func.func @transform_1(%arg0: i32, %arg1: i32) -> (i32, i32) {
    %c0_i32 = arith.constant 0 : i32
    %c0_i32_0 = arith.constant 0 : i32
    return %arg1, %c0_i32 : i32, i32
  }
  func.func @transform_2(%arg0: i32, %arg1: i32) -> (i32, i32) {
    %c0_i32 = arith.constant 0 : i32
    %c0_i32_0 = arith.constant 0 : i32
    %c0_i32_1 = arith.constant 0 : i32
    return %c0_i32, %c0_i32_0 : i32, i32
  }
  func.func @transform_3(%arg0: i32, %arg1: i32) -> (i32, i32) {
    %c0_i32 = arith.constant 0 : i32
    %c0_i32_0 = arith.constant 0 : i32
    return %arg0, %c0_i32 : i32, i32
  }
}

module attributes {stable_mosaic.version = 11 : i64} {
  func.func @_gemm_bias_relu_kernel(%arg0: i32, %arg1: i32, %arg2: memref<128x128xbf16, #tpu.memory_space<vmem>>, %arg3: memref<128x128xbf16, #tpu.memory_space<vmem>>, %arg4: memref<1x128xf32, #tpu.memory_space<vmem>>, %arg5: memref<128x128xbf16, #tpu.memory_space<vmem>>, %arg6: memref<128x128xf32, #tpu.memory_space<vmem>>) attributes {dimension_semantics = [#tpu.dimension_semantics<parallel>, #tpu.dimension_semantics<arbitrary>], iteration_bounds = array<i64: 1, 1>, scalar_prefetch = 0 : i64, scratch_operands = 1 : i64, tpu.core_type = #tpu.core_type<tc>, window_params = [{transform_indices = @transform_0, window_bounds = array<i64: 128, 128>}, {transform_indices = @transform_1, window_bounds = array<i64: 128, 128>}, {pipeline_mode = #tpu.pipeline_mode<synchronous>, transform_indices = @transform_2, window_bounds = array<i64: 1, 128>}, {transform_indices = @transform_3, window_bounds = array<i64: 128, 128>}]} {
    %c0_i32 = arith.constant 0 : i32
    %0 = arith.cmpi eq, %arg1, %c0_i32 : i32
    %1 = arith.extui %0 : i1 to i32
    %c0_i32_0 = arith.constant 0 : i32
    %2 = arith.cmpi ne, %1, %c0_i32_0 : i32
    scf.if %2 {
      %cst_10 = arith.constant 0.000000e+00 : f32
      %12 = vector.broadcast %cst_10 : f32 to vector<128x128xf32>
      %c0_11 = arith.constant 0 : index
      %c0_12 = arith.constant 0 : index
      %13 = vector.load %arg6[%c0_11, %c0_12] : memref<128x128xf32, #tpu.memory_space<vmem>>, vector<128x128xf32>
      tpu.vector_store %arg6[%c0_11, %c0_12], %12 {strides = array<i32>} : memref<128x128xf32, #tpu.memory_space<vmem>>, vector<128x128xf32>,
    } else {
    }
    %c0 = arith.constant 0 : index
    %c0_1 = arith.constant 0 : index
    %3 = vector.load %arg6[%c0, %c0_1] : memref<128x128xf32, #tpu.memory_space<vmem>>, vector<128x128xf32>
    %c0_2 = arith.constant 0 : index
    %c0_3 = arith.constant 0 : index
    %4 = vector.load %arg2[%c0_2, %c0_3] : memref<128x128xbf16, #tpu.memory_space<vmem>>, vector<128x128xbf16>
    %c0_4 = arith.constant 0 : index
    %c0_5 = arith.constant 0 : index
    %5 = vector.load %arg3[%c0_4, %c0_5] : memref<128x128xbf16, #tpu.memory_space<vmem>>, vector<128x128xbf16>
    %cst = arith.constant dense<0.000000e+00> : vector<128x128xf32>
    %6 = tpu.matmul %4, %5, %cst {dimension_numbers = #tpu.dot_dimension_numbers<[1], [0], [0], [1], [0, 0, 1, 1], [], []>} : vector<128x128xbf16>, vector<128x128xbf16>, vector<128x128xf32> -> vector<128x128xf32>
    %7 = arith.addf %3, %6 : vector<128x128xf32>
    %c0_6 = arith.constant 0 : index
    %c0_7 = arith.constant 0 : index
    %8 = vector.load %arg6[%c0_6, %c0_7] : memref<128x128xf32, #tpu.memory_space<vmem>>, vector<128x128xf32>
    tpu.vector_store %arg6[%c0_6, %c0_7], %7 {strides = array<i32>} : memref<128x128xf32, #tpu.memory_space<vmem>>, vector<128x128xf32>,
    %c0_i32_8 = arith.constant 0 : i32
    %9 = arith.cmpi eq, %arg1, %c0_i32_8 : i32
    %10 = arith.extui %9 : i1 to i32
    %c0_i32_9 = arith.constant 0 : i32
    %11 = arith.cmpi ne, %10, %c0_i32_9 : i32
    scf.if %11 {
      %c0_10 = arith.constant 0 : index
      %c0_11 = arith.constant 0 : index
      %12 = vector.load %arg6[%c0_10, %c0_11] : memref<128x128xf32, #tpu.memory_space<vmem>>, vector<128x128xf32>
      %c0_12 = arith.constant 0 : index
      %c0_13 = arith.constant 0 : index
      %13 = vector.load %arg4[%c0_12, %c0_13] : memref<1x128xf32, #tpu.memory_space<vmem>>, vector<1x128xf32>
      %14 = vector.broadcast %13 : vector<1x128xf32> to vector<128x128xf32>
      %15 = arith.addf %12, %14 : vector<128x128xf32>
      %cst_14 = arith.constant 0.000000e+00 : f32
      %16 = vector.broadcast %cst_14 : f32 to vector<128x128xf32>
      %17 = arith.maximumf %15, %16 : vector<128x128xf32>
      %18 = arith.truncf %17 : vector<128x128xf32> to vector<128x128xbf16>
      %c0_15 = arith.constant 0 : index
      %c0_16 = arith.constant 0 : index
      %19 = vector.load %arg5[%c0_15, %c0_16] : memref<128x128xbf16, #tpu.memory_space<vmem>>, vector<128x128xbf16>
      tpu.vector_store %arg5[%c0_15, %c0_16], %18 {strides = array<i32>} : memref<128x128xbf16, #tpu.memory_space<vmem>>, vector<128x128xbf16>,
    } else {
    }
    return
  }
  func.func @transform_0(%arg0: i32, %arg1: i32) -> (i32, i32) {
    %c0_i32 = arith.constant 0 : i32
    return %arg0, %arg1 : i32, i32
  }
  func.func @transform_1(%arg0: i32, %arg1: i32) -> (i32, i32) {
    %c0_i32 = arith.constant 0 : i32
    %c0_i32_0 = arith.constant 0 : i32
    return %arg1, %c0_i32 : i32, i32
  }
  func.func @transform_2(%arg0: i32, %arg1: i32) -> (i32, i32) {
    %c0_i32 = arith.constant 0 : i32
    %c0_i32_0 = arith.constant 0 : i32
    %c0_i32_1 = arith.constant 0 : i32
    return %c0_i32, %c0_i32_0 : i32, i32
  }
  func.func @transform_3(%arg0: i32, %arg1: i32) -> (i32, i32) {
    %c0_i32 = arith.constant 0 : i32
    %c0_i32_0 = arith.constant 0 : i32
    return %arg0, %c0_i32 : i32, i32
  }
}

module attributes {stable_mosaic.version = 11 : i64} {
  func.func @_gemm_bias_relu_kernel(%arg0: i32, %arg1: i32, %arg2: memref<32x256xbf16, #tpu.memory_space<vmem>>, %arg3: memref<256x128xbf16, #tpu.memory_space<vmem>>, %arg4: memref<1x128xf32, #tpu.memory_space<vmem>>, %arg5: memref<32x128xbf16, #tpu.memory_space<vmem>>, %arg6: memref<32x128xf32, #tpu.memory_space<vmem>>) attributes {dimension_semantics = [#tpu.dimension_semantics<parallel>, #tpu.dimension_semantics<arbitrary>], iteration_bounds = array<i64: 1, 1>, scalar_prefetch = 0 : i64, scratch_operands = 1 : i64, tpu.core_type = #tpu.core_type<tc>, window_params = [{transform_indices = @transform_0, window_bounds = array<i64: 32, 256>}, {transform_indices = @transform_1, window_bounds = array<i64: 256, 128>}, {pipeline_mode = #tpu.pipeline_mode<synchronous>, transform_indices = @transform_2, window_bounds = array<i64: 1, 128>}, {transform_indices = @transform_3, window_bounds = array<i64: 32, 128>}]} {
    %c0_i32 = arith.constant 0 : i32
    %0 = arith.cmpi eq, %arg1, %c0_i32 : i32
    %1 = arith.extui %0 : i1 to i32
    %c0_i32_0 = arith.constant 0 : i32
    %2 = arith.cmpi ne, %1, %c0_i32_0 : i32
    scf.if %2 {
      %cst_10 = arith.constant 0.000000e+00 : f32
      %12 = vector.broadcast %cst_10 : f32 to vector<32x128xf32>
      %c0_11 = arith.constant 0 : index
      %c0_12 = arith.constant 0 : index
      %13 = vector.load %arg6[%c0_11, %c0_12] : memref<32x128xf32, #tpu.memory_space<vmem>>, vector<32x128xf32>
      tpu.vector_store %arg6[%c0_11, %c0_12], %12 {strides = array<i32>} : memref<32x128xf32, #tpu.memory_space<vmem>>, vector<32x128xf32>,
    } else {
    }
    %c0 = arith.constant 0 : index
    %c0_1 = arith.constant 0 : index
    %3 = vector.load %arg6[%c0, %c0_1] : memref<32x128xf32, #tpu.memory_space<vmem>>, vector<32x128xf32>
    %c0_2 = arith.constant 0 : index
    %c0_3 = arith.constant 0 : index
    %4 = vector.load %arg2[%c0_2, %c0_3] : memref<32x256xbf16, #tpu.memory_space<vmem>>, vector<32x256xbf16>
    %c0_4 = arith.constant 0 : index
    %c0_5 = arith.constant 0 : index
    %5 = vector.load %arg3[%c0_4, %c0_5] : memref<256x128xbf16, #tpu.memory_space<vmem>>, vector<256x128xbf16>
    %cst = arith.constant dense<0.000000e+00> : vector<32x128xf32>
    %6 = tpu.matmul %4, %5, %cst {dimension_numbers = #tpu.dot_dimension_numbers<[1], [0], [0], [1], [0, 0, 1, 1], [], []>} : vector<32x256xbf16>, vector<256x128xbf16>, vector<32x128xf32> -> vector<32x128xf32>
    %7 = arith.addf %3, %6 : vector<32x128xf32>
    %c0_6 = arith.constant 0 : index
    %c0_7 = arith.constant 0 : index
    %8 = vector.load %arg6[%c0_6, %c0_7] : memref<32x128xf32, #tpu.memory_space<vmem>>, vector<32x128xf32>
    tpu.vector_store %arg6[%c0_6, %c0_7], %7 {strides = array<i32>} : memref<32x128xf32, #tpu.memory_space<vmem>>, vector<32x128xf32>,
    %c0_i32_8 = arith.constant 0 : i32
    %9 = arith.cmpi eq, %arg1, %c0_i32_8 : i32
    %10 = arith.extui %9 : i1 to i32
    %c0_i32_9 = arith.constant 0 : i32
    %11 = arith.cmpi ne, %10, %c0_i32_9 : i32
    scf.if %11 {
      %c0_10 = arith.constant 0 : index
      %c0_11 = arith.constant 0 : index
      %12 = vector.load %arg6[%c0_10, %c0_11] : memref<32x128xf32, #tpu.memory_space<vmem>>, vector<32x128xf32>
      %c0_12 = arith.constant 0 : index
      %c0_13 = arith.constant 0 : index
      %13 = vector.load %arg4[%c0_12, %c0_13] : memref<1x128xf32, #tpu.memory_space<vmem>>, vector<1x128xf32>
      %14 = vector.broadcast %13 : vector<1x128xf32> to vector<32x128xf32>
      %15 = arith.addf %12, %14 : vector<32x128xf32>
      %cst_14 = arith.constant 0.000000e+00 : f32
      %16 = vector.broadcast %cst_14 : f32 to vector<32x128xf32>
      %17 = arith.maximumf %15, %16 : vector<32x128xf32>
      %18 = arith.truncf %17 : vector<32x128xf32> to vector<32x128xbf16>
      %c0_15 = arith.constant 0 : index
      %c0_16 = arith.constant 0 : index
      %19 = vector.load %arg5[%c0_15, %c0_16] : memref<32x128xbf16, #tpu.memory_space<vmem>>, vector<32x128xbf16>
      tpu.vector_store %arg5[%c0_15, %c0_16], %18 {strides = array<i32>} : memref<32x128xbf16, #tpu.memory_space<vmem>>, vector<32x128xbf16>,
    } else {
    }
    return
  }
  func.func @transform_0(%arg0: i32, %arg1: i32) -> (i32, i32) {
    %c0_i32 = arith.constant 0 : i32
    return %arg0, %arg1 : i32, i32
  }
  func.func @transform_1(%arg0: i32, %arg1: i32) -> (i32, i32) {
    %c0_i32 = arith.constant 0 : i32
    %c0_i32_0 = arith.constant 0 : i32
    return %arg1, %c0_i32 : i32, i32
  }
  func.func @transform_2(%arg0: i32, %arg1: i32) -> (i32, i32) {
    %c0_i32 = arith.constant 0 : i32
    %c0_i32_0 = arith.constant 0 : i32
    %c0_i32_1 = arith.constant 0 : i32
    return %c0_i32, %c0_i32_0 : i32, i32
  }
  func.func @transform_3(%arg0: i32, %arg1: i32) -> (i32, i32) {
    %c0_i32 = arith.constant 0 : i32
    %c0_i32_0 = arith.constant 0 : i32
    return %arg0, %c0_i32 : i32, i32
  }
}

module attributes {stable_mosaic.version = 11 : i64} {
  func.func @_gemm_bias_relu_kernel(%arg0: i32, %arg1: i32, %arg2: memref<8x384xbf16, #tpu.memory_space<vmem>>, %arg3: memref<384x128xbf16, #tpu.memory_space<vmem>>, %arg4: memref<1x128xf32, #tpu.memory_space<vmem>>, %arg5: memref<8x128xbf16, #tpu.memory_space<vmem>>, %arg6: memref<8x128xf32, #tpu.memory_space<vmem>>) attributes {dimension_semantics = [#tpu.dimension_semantics<parallel>, #tpu.dimension_semantics<arbitrary>], iteration_bounds = array<i64: 1, 1>, scalar_prefetch = 0 : i64, scratch_operands = 1 : i64, tpu.core_type = #tpu.core_type<tc>, window_params = [{transform_indices = @transform_0, window_bounds = array<i64: 8, 384>}, {transform_indices = @transform_1, window_bounds = array<i64: 384, 128>}, {pipeline_mode = #tpu.pipeline_mode<synchronous>, transform_indices = @transform_2, window_bounds = array<i64: 1, 128>}, {transform_indices = @transform_3, window_bounds = array<i64: 8, 128>}]} {
    %c0_i32 = arith.constant 0 : i32
    %0 = arith.cmpi eq, %arg1, %c0_i32 : i32
    %1 = arith.extui %0 : i1 to i32
    %c0_i32_0 = arith.constant 0 : i32
    %2 = arith.cmpi ne, %1, %c0_i32_0 : i32
    scf.if %2 {
      %cst_10 = arith.constant 0.000000e+00 : f32
      %12 = vector.broadcast %cst_10 : f32 to vector<8x128xf32>
      %c0_11 = arith.constant 0 : index
      %c0_12 = arith.constant 0 : index
      %13 = vector.load %arg6[%c0_11, %c0_12] : memref<8x128xf32, #tpu.memory_space<vmem>>, vector<8x128xf32>
      tpu.vector_store %arg6[%c0_11, %c0_12], %12 {strides = array<i32>} : memref<8x128xf32, #tpu.memory_space<vmem>>, vector<8x128xf32>,
    } else {
    }
    %c0 = arith.constant 0 : index
    %c0_1 = arith.constant 0 : index
    %3 = vector.load %arg6[%c0, %c0_1] : memref<8x128xf32, #tpu.memory_space<vmem>>, vector<8x128xf32>
    %c0_2 = arith.constant 0 : index
    %c0_3 = arith.constant 0 : index
    %4 = vector.load %arg2[%c0_2, %c0_3] : memref<8x384xbf16, #tpu.memory_space<vmem>>, vector<8x384xbf16>
    %c0_4 = arith.constant 0 : index
    %c0_5 = arith.constant 0 : index
    %5 = vector.load %arg3[%c0_4, %c0_5] : memref<384x128xbf16, #tpu.memory_space<vmem>>, vector<384x128xbf16>
    %cst = arith.constant dense<0.000000e+00> : vector<8x128xf32>
    %6 = tpu.matmul %4, %5, %cst {dimension_numbers = #tpu.dot_dimension_numbers<[1], [0], [0], [1], [0, 0, 1, 1], [], []>} : vector<8x384xbf16>, vector<384x128xbf16>, vector<8x128xf32> -> vector<8x128xf32>
    %7 = arith.addf %3, %6 : vector<8x128xf32>
    %c0_6 = arith.constant 0 : index
    %c0_7 = arith.constant 0 : index
    %8 = vector.load %arg6[%c0_6, %c0_7] : memref<8x128xf32, #tpu.memory_space<vmem>>, vector<8x128xf32>
    tpu.vector_store %arg6[%c0_6, %c0_7], %7 {strides = array<i32>} : memref<8x128xf32, #tpu.memory_space<vmem>>, vector<8x128xf32>,
    %c0_i32_8 = arith.constant 0 : i32
    %9 = arith.cmpi eq, %arg1, %c0_i32_8 : i32
    %10 = arith.extui %9 : i1 to i32
    %c0_i32_9 = arith.constant 0 : i32
    %11 = arith.cmpi ne, %10, %c0_i32_9 : i32
    scf.if %11 {
      %c0_10 = arith.constant 0 : index
      %c0_11 = arith.constant 0 : index
      %12 = vector.load %arg6[%c0_10, %c0_11] : memref<8x128xf32, #tpu.memory_space<vmem>>, vector<8x128xf32>
      %c0_12 = arith.constant 0 : index
      %c0_13 = arith.constant 0 : index
      %13 = vector.load %arg4[%c0_12, %c0_13] : memref<1x128xf32, #tpu.memory_space<vmem>>, vector<1x128xf32>
      %14 = vector.broadcast %13 : vector<1x128xf32> to vector<8x128xf32>
      %15 = arith.addf %12, %14 : vector<8x128xf32>
      %cst_14 = arith.constant 0.000000e+00 : f32
      %16 = vector.broadcast %cst_14 : f32 to vector<8x128xf32>
      %17 = arith.maximumf %15, %16 : vector<8x128xf32>
      %18 = arith.truncf %17 : vector<8x128xf32> to vector<8x128xbf16>
      %c0_15 = arith.constant 0 : index
      %c0_16 = arith.constant 0 : index
      %19 = vector.load %arg5[%c0_15, %c0_16] : memref<8x128xbf16, #tpu.memory_space<vmem>>, vector<8x128xbf16>
      tpu.vector_store %arg5[%c0_15, %c0_16], %18 {strides = array<i32>} : memref<8x128xbf16, #tpu.memory_space<vmem>>, vector<8x128xbf16>,
    } else {
    }
    return
  }
  func.func @transform_0(%arg0: i32, %arg1: i32) -> (i32, i32) {
    %c0_i32 = arith.constant 0 : i32
    return %arg0, %arg1 : i32, i32
  }
  func.func @transform_1(%arg0: i32, %arg1: i32) -> (i32, i32) {
    %c0_i32 = arith.constant 0 : i32
    %c0_i32_0 = arith.constant 0 : i32
    return %arg1, %c0_i32 : i32, i32
  }
  func.func @transform_2(%arg0: i32, %arg1: i32) -> (i32, i32) {
    %c0_i32 = arith.constant 0 : i32
    %c0_i32_0 = arith.constant 0 : i32
    %c0_i32_1 = arith.constant 0 : i32
    return %c0_i32, %c0_i32_0 : i32, i32
  }
  func.func @transform_3(%arg0: i32, %arg1: i32) -> (i32, i32) {
    %c0_i32 = arith.constant 0 : i32
    %c0_i32_0 = arith.constant 0 : i32
    return %arg0, %c0_i32 : i32, i32
  }
}

</mosaic_0001>

<bundles_post_ra>
// kernel: _backbone_forward.5
= control target key start
LH: loop header
LB: loop body
LE: loop exit
PB: predicated region body
PF: predicated region fallthrough
CT: control target
= control target key end

     0   :  { %s721_s1 = inlined_call_operand.vmem [shape: bf16[128,128], index: 1, kind: input, shape index: {}]   ;;  %s722_s0 = inlined_call_operand.vmem [shape: bf16[128,128], index: 0, kind: input, shape index: {}]   ;;  %s723_s2 = inlined_call_operand.vmem [shape: f32[1,128], index: 2, kind: input, shape index: {}]   ;;  %s724_s3 = inlined_call_operand.vmem [shape: bf16[128,128], index: 3, kind: output, shape index: {}]  }
   0x1   :  { %v610_v0 = vld [vmem:[%s721_s1] sm:$0xff]   ;;  %v611_v1 = vld [vmem:[%s721_s1 + $0x8] sm:$0xff]   ;;  %v612_v2 = vld [vmem:[%s721_s1 + $0x10] sm:$0xff]  }
   0x2   :  { %562 = vmatprep.subr.bf16.mxu0 %v610_v0  ;;  %594 = vmatprep.subr.bf16.mxu1 %v610_v0  ;;  %v613_v3 = vld [vmem:[%s721_s1 + $0x18] sm:$0xff]   ;;  %v618_v4 = vld [vmem:[%s722_s0] sm:$0xff]   ;;  %v615_v7 = vld [vmem:[%s721_s1 + $0x28] sm:$0xff]  }
   0x3   :  { %563 = vmatpush3.bf16.msra.mxu0 %v610_v0  ;;  %602 = vmatpush3.bf16.msra.mxu1 %v610_v0  ;;  %v619_v5 = vld [vmem:[%s722_s0 + $0x20] sm:$0xff]   ;;  %v616_v8 = vld [vmem:[%s721_s1 + $0x30] sm:$0xff]   ;;  %v617_v9 = vld [vmem:[%s721_s1 + $0x38] sm:$0xff]  }
   0x4   :  { %564 = vmatprep.subr.bf16.mxu0 %v611_v1  ;;  %595 = vmatprep.subr.bf16.mxu1 %v611_v1  ;;  %v614_v6 = vld [vmem:[%s721_s1 + $0x20] sm:$0xff]   ;;  %v620_v10 = vld [vmem:[%s722_s0 + $0x8] sm:$0xff]   ;;  %v622_v12 = vld [vmem:[%s722_s0 + $0x10] sm:$0xff]  }
   0x5   :  { %578 = vmatprep.mubr.bf16.mxu0 %v618_v4  ;;  %586 = vmatprep.mubr.bf16.mxu1 %v619_v5  ;;  %v621_v11 = vld [vmem:[%s722_s0 + $0x28] sm:$0xff]   ;;  %v623_v13 = vld [vmem:[%s722_s0 + $0x30] sm:$0xff]   ;;  %v624_v14 = vld [vmem:[%s722_s0 + $0x18] sm:$0xff]  }
   0x6   :  { %v625_v15 = vld [vmem:[%s722_s0 + $0x38] sm:$0xff]   ;;  %v466_v16 = vld [vmem:[%s723_s2] ss:$0 sm:$0xff] }
   0x7   :  { %565 = vmatpush3.bf16.msra.mxu0 %v611_v1  ;;  %603 = vmatpush3.bf16.msra.mxu1 %v611_v1 }
   0x8   :  { %566 = vmatprep.subr.bf16.mxu0 %v612_v2  ;;  %596 = vmatprep.subr.bf16.mxu1 %v612_v2 }
   0xb   :  { %567 = vmatpush3.bf16.msra.mxu0 %v612_v2  ;;  %604 = vmatpush3.bf16.msra.mxu1 %v612_v2 }
   0xc   :  { %568 = vmatprep.subr.bf16.mxu0 %v613_v3  ;;  %597 = vmatprep.subr.bf16.mxu1 %v613_v3 }
   0xf   :  { %569 = vmatpush3.bf16.msra.mxu0 %v613_v3  ;;  %605 = vmatpush3.bf16.msra.mxu1 %v613_v3 }
  0x10   :  { %570 = vmatprep.subr.bf16.mxu0 %v614_v6  ;;  %598 = vmatprep.subr.bf16.mxu1 %v614_v6 }
  0x13   :  { %571 = vmatpush3.bf16.msra.mxu0 %v614_v6  ;;  %606 = vmatpush3.bf16.msra.mxu1 %v614_v6 }
  0x14   :  { %572 = vmatprep.subr.bf16.mxu0 %v615_v7  ;;  %599 = vmatprep.subr.bf16.mxu1 %v615_v7 }
  0x17   :  { %573 = vmatpush3.bf16.msra.mxu0 %v615_v7  ;;  %607 = vmatpush3.bf16.msra.mxu1 %v615_v7 }
  0x18   :  { %574 = vmatprep.subr.bf16.mxu0 %v616_v8  ;;  %600 = vmatprep.subr.bf16.mxu1 %v616_v8 }
  0x1b   :  { %575 = vmatpush3.bf16.msra.mxu0 %v616_v8  ;;  %608 = vmatpush3.bf16.msra.mxu1 %v616_v8 }
  0x1c   :  { %576 = vmatprep.subr.bf16.mxu0 %v617_v9  ;;  %601 = vmatprep.subr.bf16.mxu1 %v617_v9 }
  0x1f   :  { %577 = vmatpush3.bf16.msra.mxu0 %v617_v9  ;;  %609 = vmatpush3.bf16.msra.mxu1 %v617_v9 }
  0x22   :  { %579 = vmatmul.mubr.bf16.vlgmr.msra.gmra.mrb[0].mxu0 %v620_v10  ;;  %587 = vmatmul.mubr.bf16.vlgmr.msra.gmra.mrb[0].mxu1 %v621_v11 }
  0x23   :  { %582 = vmatprep.mubr.bf16.mxu0 %v622_v12  ;;  %590 = vmatprep.mubr.bf16.mxu1 %v623_v13 }
  0x2a   :  { %583 = vmatmul.mubr.bf16.gmra.mrb[4].mxu0 %v624_v14  ;;  %591 = vmatmul.mubr.bf16.gmra.mrb[4].mxu1 %v625_v15 }
  0xf5   :  { %v580_v17 = vpop.f32.mrb[0].mxu0  ;;  %v588_v18 = vpop.f32.mrb[0].mxu1 }
  0xf6   :  { %v336_v19 = vadd.f32 %v580_v17, %v466_v16  ;;  %v344_v20 = vadd.f32 %v588_v18, %v466_v16  ;;  %v213_v21 = vpop.f32.mrb[1].mxu0  ;;  %v245_v22 = vpop.f32.mrb[1].mxu1 }
  0xf7   :  { %v334_v23 = vadd.f32 %v466_v16, %v213_v21  ;;  %v342_v24 = vadd.f32 %v466_v16, %v245_v22  ;;  %v581_v25 = vpop.f32.mrb[2].mxu0  ;;  %v589_v26 = vpop.f32.mrb[2].mxu1 }
  0xf8   :  { %v337_v27 = vadd.f32 %v581_v25, %v466_v16  ;;  %v345_v28 = vadd.f32 %v589_v26, %v466_v16  ;;  %v216_v29 = vpop.f32.mrb[3].mxu0  ;;  %v248_v30 = vpop.f32.mrb[3].mxu1  ;;  %v352_v33 = vmax.f32 %v336_v19, 0.0  ;;  %v360_v34 = vmax.f32 %v344_v20, 0.0 }
  0xf9   :  { %v335_v31 = vadd.f32 %v466_v16, %v216_v29  ;;  %v343_v32 = vadd.f32 %v466_v16, %v248_v30  ;;  %v350_v37 = vmax.f32 %v334_v23, 0.0  ;;  %v358_v38 = vmax.f32 %v342_v24, 0.0 }
  0xfa   :  { %v353_v35 = vmax.f32 %v337_v27, 0.0  ;;  %v361_v36 = vmax.f32 %v345_v28, 0.0 }
  0xfb   :  { %v351_v39 = vmax.f32 %v335_v31, 0.0  ;;  %v359_v40 = vmax.f32 %v343_v32, 0.0 }
  0xfc   :  { %v507_v41 = vpack.c.bf16 %v353_v35, %v352_v33  ;;  %v527_v42 = vpack.c.bf16 %v361_v36, %v360_v34 }
  0xfd   :  { %v502_v43 = vpack.c.bf16 %v351_v39, %v350_v37  ;;  %v522_v44 = vpack.c.bf16 %v359_v40, %v358_v38  ;;  %v584_v45 = vpop.f32.mrb[4].mxu0  ;;  %v592_v46 = vpop.f32.mrb[4].mxu1 }
  0xfe   :  { %539 = vst [vmem:[%s724_s3 + $0x8] sm:$0xff] %v507_v41   ;;  %543 = vst [vmem:[%s724_s3 + $0x28] sm:$0xff] %v527_v42   ;;  %v340_v47 = vadd.f32 %v584_v45, %v466_v16  ;;  %v348_v48 = vadd.f32 %v592_v46, %v466_v16  ;;  %v229_v49 = vpop.f32.mrb[5].mxu0  ;;  %v261_v50 = vpop.f32.mrb[5].mxu1 }
  0xff   :  { %503 = vst [vmem:[%s724_s3] sm:$0xff] %v502_v43   ;;  %542 = vst [vmem:[%s724_s3 + $0x20] sm:$0xff] %v522_v44   ;;  %v338_v51 = vadd.f32 %v466_v16, %v229_v49  ;;  %v346_v52 = vadd.f32 %v466_v16, %v261_v50  ;;  %v585_v53 = vpop.f32.mrb[6].mxu0  ;;  %v593_v54 = vpop.f32.mrb[6].mxu1 }
 0x100   :  { %v341_v55 = vadd.f32 %v585_v53, %v466_v16  ;;  %v349_v56 = vadd.f32 %v593_v54, %v466_v16  ;;  %v232_v57 = vpop.f32.mrb[7].mxu0  ;;  %v264_v58 = vpop.f32.mrb[7].mxu1  ;;  %v356_v61 = vmax.f32 %v340_v47, 0.0  ;;  %v364_v62 = vmax.f32 %v348_v48, 0.0 }
 0x101   :  { %v339_v59 = vadd.f32 %v466_v16, %v232_v57  ;;  %v347_v60 = vadd.f32 %v466_v16, %v264_v58  ;;  %v354_v1 = vmax.f32 %v338_v51, 0.0  ;;  %v362_v2 = vmax.f32 %v346_v52, 0.0 }
 0x102   :  { %v357_v63 = vmax.f32 %v341_v55, 0.0  ;;  %v365_v0 = vmax.f32 %v349_v56, 0.0 }
 0x103   :  { %v355_v3 = vmax.f32 %v339_v59, 0.0  ;;  %v363_v4 = vmax.f32 %v347_v60, 0.0 }
 0x104   :  { %v517_v5 = vpack.c.bf16 %v357_v63, %v356_v61  ;;  %v537_v6 = vpack.c.bf16 %v365_v0, %v364_v62 }
 0x105   :  { %v512_v7 = vpack.c.bf16 %v355_v3, %v354_v1  ;;  %v532_v8 = vpack.c.bf16 %v363_v4, %v362_v2 }
 0x106   :  { %541 = vst [vmem:[%s724_s3 + $0x18] sm:$0xff] %v517_v5   ;;  %545 = vst [vmem:[%s724_s3 + $0x38] sm:$0xff] %v537_v6  }
 0x107   :  { %540 = vst [vmem:[%s724_s3 + $0x10] sm:$0xff] %v512_v7   ;;  %544 = vst [vmem:[%s724_s3 + $0x30] sm:$0xff] %v532_v8  }

// kernel: _backbone_forward.4
= control target key start
LH: loop header
LB: loop body
LE: loop exit
PB: predicated region body
PF: predicated region fallthrough
CT: control target
= control target key end

     0   :  { %s1430_s12 = smov 0   ;;  %s1432_s13 = smov 0   ;;  %s1567_s0 = inlined_call_operand.vmem [shape: bf16[512,128], index: 0, kind: input, shape index: {}]   ;;  %s1568_s1 = inlined_call_operand.vmem [shape: bf16[128,128], index: 1, kind: input, shape index: {}]   ;;  %s1569_s2 = inlined_call_operand.vmem [shape: f32[1,128], index: 2, kind: input, shape index: {}]   ;;  %s1570_s3 = inlined_call_operand.vmem [shape: bf16[512,128], index: 3, kind: output, shape index: {}]  }
   0x1   :  { %s1434_s14 = smov 0  }
   0x2 LB: > { %s25_s15 = sadd.s32 1, %s1404_s13  ;;  %p1059_p0 = scmp.ge.s32.totalorder %s1408_s14, 1  ;;  %s1408_s14 = sphi %s1434_s14, %s13_s14   ;;  %s1404_s13 = sphi %s1432_s13, %s1572_s13   ;;  %s1400_s12 = sphi %s1430_s12, %s1571_s12  }
   0x3   : > { %p27_p1 = scmp.ge.s32.totalorder %s25_s15, 2  ;;  %p166_p2 = scmp.lt.s32.totalorder %s1408_s14, 3 }
   0x5   : > { %s1574_s15 = smov (%p27_p1, %s25_s15), 0  ;;  %p167_p3 = pnand %p1059_p0, %p166_p2 }
   0x6   : > { %v1362_v0 = vld [vmem:[%s1568_s1] sm:$0xff] (!%p167_p3)   ;;  %s1060_s18 = sshll.u32 (!%p167_p3), %s1400_s12, 5  ;;  %v1363_v1 = vld [vmem:[%s1568_s1 + $0x8] sm:$0xff] (!%p167_p3)   ;;  %v1364_v2 = vld [vmem:[%s1568_s1 + $0x10] sm:$0xff] (!%p167_p3)  }
   0x7   : > { %170 = sbr.rel (%p167_p3) target bundleno = 285 (0x11d), region = 32  ;;  %p199_p4 = scmp.lt.s32.totalorder (!%p167_p3), %s1060_s18, 63  ;;  %1274 = vmatprep.subr.bf16.mxu0 (!%p167_p3), %v1362_v0  ;;  %1322 = vmatprep.subr.bf16.mxu1 (!%p167_p3), %v1362_v0  ;;  %v1365_v3 = vld [vmem:[%s1568_s1 + $0x18] sm:$0xff] (!%p167_p3)   ;;  %v1366_v6 = vld [vmem:[%s1568_s1 + $0x20] sm:$0xff] (!%p167_p3)   ;;  %v1367_v7 = vld [vmem:[%s1568_s1 + $0x28] sm:$0xff] (!%p167_p3)  }
   0x8   : > { %1275 = vmatpush3.bf16.msra.mxu0 (!%p167_p3), %v1362_v0  ;;  %1330 = vmatpush3.bf16.msra.mxu1 (!%p167_p3), %v1362_v0  ;;  %v1368_v8 = vld [vmem:[%s1568_s1 + $0x30] sm:$0xff] (!%p167_p3)   ;;  %v1369_v9 = vld [vmem:[%s1568_s1 + $0x38] sm:$0xff] (!%p167_p3)   ;;  %v1501_v24 = vld [vmem:[%s1569_s2] ss:$0 sm:$0xff] (!%p167_p3) }
   0x9   : > { %1276 = vmatprep.subr.bf16.mxu0 (!%p167_p3), %v1363_v1  ;;  %1323 = vmatprep.subr.bf16.mxu1 (!%p167_p3), %v1363_v1 }
   0xc   : > { %1277 = vmatpush3.bf16.msra.mxu0 (!%p167_p3), %v1363_v1  ;;  %1331 = vmatpush3.bf16.msra.mxu1 (!%p167_p3), %v1363_v1 }
   0xd   : > { %1278 = vmatprep.subr.bf16.mxu0 (!%p167_p3), %v1364_v2  ;;  %1324 = vmatprep.subr.bf16.mxu1 (!%p167_p3), %v1364_v2 }
   0xe   : > { %s1576_s18 = smov (!%p199_p4, %s1060_s18), 63 }
   0xf   : > { %s1061_s23 = sshll.u32 %s1576_s18, 2 }
  0x10   : > { %s1465_s26 = scalar_lea.vmem %s1567_s0, %s1061_s23  ;;  %1279 = vmatpush3.bf16.msra.mxu0 %v1364_v2  ;;  %1332 = vmatpush3.bf16.msra.mxu1 %v1364_v2  ;;  %s1516_s17 = scalar_lea.vmem %s1570_s3, %s1061_s23 }
  0x11   : > { %v1370_v4 = vld [vmem:[%s1465_s26] sm:$0xff]   ;;  %1280 = vmatprep.subr.bf16.mxu0 %v1365_v3  ;;  %1325 = vmatprep.subr.bf16.mxu1 %v1365_v3  ;;  %v1372_v10 = vld [vmem:[%s1465_s26 + $0x8] sm:$0xff]   ;;  %v1374_v12 = vld [vmem:[%s1465_s26 + $0x10] sm:$0xff]  }
  0x12   : > { %v1371_v5 = vld [vmem:[%s1465_s26 + $0x40] sm:$0xff]   ;;  %1290 = vmatprep.mubr.bf16.mxu0 %v1370_v4  ;;  %v1373_v11 = vld [vmem:[%s1465_s26 + $0x48] sm:$0xff]   ;;  %v1375_v13 = vld [vmem:[%s1465_s26 + $0x50] sm:$0xff]  }
  0x13   : > { %1306 = vmatprep.mubr.bf16.mxu1 %v1371_v5  ;;  %v1376_v14 = vld [vmem:[%s1465_s26 + $0x18] sm:$0xff]   ;;  %v1378_v16 = vld [vmem:[%s1465_s26 + $0x20] sm:$0xff]   ;;  %v1380_v18 = vld [vmem:[%s1465_s26 + $0x28] sm:$0xff]  }
  0x14   : > { %1281 = vmatpush3.bf16.msra.mxu0 %v1365_v3  ;;  %1333 = vmatpush3.bf16.msra.mxu1 %v1365_v3  ;;  %v1377_v15 = vld [vmem:[%s1465_s26 + $0x58] sm:$0xff]   ;;  %v1379_v17 = vld [vmem:[%s1465_s26 + $0x60] sm:$0xff]   ;;  %v1381_v19 = vld [vmem:[%s1465_s26 + $0x68] sm:$0xff]  }
  0x15   : > { %1282 = vmatprep.subr.bf16.mxu0 %v1366_v6  ;;  %1326 = vmatprep.subr.bf16.mxu1 %v1366_v6  ;;  %v1382_v20 = vld [vmem:[%s1465_s26 + $0x30] sm:$0xff]   ;;  %v1384_v22 = vld [vmem:[%s1465_s26 + $0x38] sm:$0xff]  }
  0x16   : > { %v1383_v21 = vld [vmem:[%s1465_s26 + $0x70] sm:$0xff]   ;;  %v1385_v23 = vld [vmem:[%s1465_s26 + $0x78] sm:$0xff]  }
  0x18   : > { %1283 = vmatpush3.bf16.msra.mxu0 %v1366_v6  ;;  %1334 = vmatpush3.bf16.msra.mxu1 %v1366_v6 }
  0x19   : > { %1284 = vmatprep.subr.bf16.mxu0 %v1367_v7  ;;  %1327 = vmatprep.subr.bf16.mxu1 %v1367_v7 }
  0x1c   : > { %1285 = vmatpush3.bf16.msra.mxu0 %v1367_v7  ;;  %1335 = vmatpush3.bf16.msra.mxu1 %v1367_v7 }
  0x1d   : > { %1286 = vmatprep.subr.bf16.mxu0 %v1368_v8  ;;  %1328 = vmatprep.subr.bf16.mxu1 %v1368_v8 }
  0x20   : > { %1287 = vmatpush3.bf16.msra.mxu0 %v1368_v8  ;;  %1336 = vmatpush3.bf16.msra.mxu1 %v1368_v8 }
  0x21   : > { %1288 = vmatprep.subr.bf16.mxu0 %v1369_v9  ;;  %1329 = vmatprep.subr.bf16.mxu1 %v1369_v9 }
  0x24   : > { %1289 = vmatpush3.bf16.msra.mxu0 %v1369_v9  ;;  %1337 = vmatpush3.bf16.msra.mxu1 %v1369_v9 }
  0x27   : > { %1291 = vmatmul.mubr.bf16.vlgmr.msra.gmra.mrb[0].mxu0 %v1372_v10  ;;  %1307 = vmatmul.mubr.bf16.vlgmr.msra.gmra.mrb[0].mxu1 %v1373_v11 }
  0x28   : > { %1294 = vmatprep.mubr.bf16.mxu0 %v1374_v12  ;;  %1310 = vmatprep.mubr.bf16.mxu1 %v1375_v13 }
  0x2f   : > { %1295 = vmatmul.mubr.bf16.gmra.mrb[4].mxu0 %v1376_v14  ;;  %1311 = vmatmul.mubr.bf16.gmra.mrb[4].mxu1 %v1377_v15 }
  0x30   : > { %1298 = vmatprep.mubr.bf16.mxu0 %v1378_v16  ;;  %1314 = vmatprep.mubr.bf16.mxu1 %v1379_v17 }
  0x37   : > { %1299 = vmatmul.mubr.bf16.gmra.mrb[8].mxu0 %v1380_v18  ;;  %1315 = vmatmul.mubr.bf16.gmra.mrb[8].mxu1 %v1381_v19 }
  0x38   : > { %1302 = vmatprep.mubr.bf16.mxu0 %v1382_v20  ;;  %1318 = vmatprep.mubr.bf16.mxu1 %v1383_v21 }
  0x3f   : > { %1303 = vmatmul.mubr.bf16.gmra.mrb[12].mxu0 %v1384_v22  ;;  %1319 = vmatmul.mubr.bf16.gmra.mrb[12].mxu1 %v1385_v23 }
  0xfa   : > { %v1292_v25 = vpop.f32.mrb[0].mxu0  ;;  %v1308_v26 = vpop.f32.mrb[0].mxu1 }
  0xfb   : > { %v749_v27 = vadd.f32 %v1292_v25, %v1501_v24  ;;  %v765_v28 = vadd.f32 %v1308_v26, %v1501_v24  ;;  %v514_v29 = vpop.f32.mrb[1].mxu0  ;;  %v578_v30 = vpop.f32.mrb[1].mxu1 }
  0xfc   : > { %v747_v31 = vadd.f32 %v1501_v24, %v514_v29  ;;  %v763_v32 = vadd.f32 %v1501_v24, %v578_v30  ;;  %v1293_v33 = vpop.f32.mrb[2].mxu0  ;;  %v1309_v34 = vpop.f32.mrb[2].mxu1 }
  0xfd   : > { %v750_v35 = vadd.f32 %v1293_v33, %v1501_v24  ;;  %v766_v36 = vadd.f32 %v1309_v34, %v1501_v24  ;;  %v517_v37 = vpop.f32.mrb[3].mxu0  ;;  %v581_v38 = vpop.f32.mrb[3].mxu1  ;;  %v781_v41 = vmax.f32 %v749_v27, 0.0  ;;  %v797_v42 = vmax.f32 %v765_v28, 0.0 }
  0xfe   : > { %v748_v39 = vadd.f32 %v1501_v24, %v517_v37  ;;  %v764_v40 = vadd.f32 %v1501_v24, %v581_v38  ;;  %v779_v45 = vmax.f32 %v747_v31, 0.0  ;;  %v795_v46 = vmax.f32 %v763_v32, 0.0 }
  0xff   : > { %v782_v43 = vmax.f32 %v750_v35, 0.0  ;;  %v798_v44 = vmax.f32 %v766_v36, 0.0 }
 0x100   : > { %v780_v47 = vmax.f32 %v748_v39, 0.0  ;;  %v796_v48 = vmax.f32 %v764_v40, 0.0 }
 0x101   : > { %v1163_v49 = vpack.c.bf16 %v782_v43, %v781_v41  ;;  %v1203_v50 = vpack.c.bf16 %v798_v44, %v797_v42 }
 0x102   : > { %v1158_v51 = vpack.c.bf16 %v780_v47, %v779_v45  ;;  %v1198_v52 = vpack.c.bf16 %v796_v48, %v795_v46  ;;  %v1296_v53 = vpop.f32.mrb[4].mxu0  ;;  %v1312_v54 = vpop.f32.mrb[4].mxu1 }
 0x103   : > { %1235 = vst [vmem:[%s1516_s17 + $0x8] sm:$0xff] %v1163_v49   ;;  %1243 = vst [vmem:[%s1516_s17 + $0x48] sm:$0xff] %v1203_v50   ;;  %v753_v55 = vadd.f32 %v1296_v53, %v1501_v24  ;;  %v769_v56 = vadd.f32 %v1312_v54, %v1501_v24  ;;  %v530_v57 = vpop.f32.mrb[5].mxu0  ;;  %v594_v58 = vpop.f32.mrb[5].mxu1 }
 0x104   : > { %1159 = vst [vmem:[%s1516_s17] sm:$0xff] %v1158_v51   ;;  %1242 = vst [vmem:[%s1516_s17 + $0x40] sm:$0xff] %v1198_v52   ;;  %v751_v59 = vadd.f32 %v1501_v24, %v530_v57  ;;  %v767_v60 = vadd.f32 %v1501_v24, %v594_v58  ;;  %v1297_v61 = vpop.f32.mrb[6].mxu0  ;;  %v1313_v62 = vpop.f32.mrb[6].mxu1 }
 0x105   : > { %v754_v63 = vadd.f32 %v1297_v61, %v1501_v24  ;;  %v770_v0 = vadd.f32 %v1313_v62, %v1501_v24  ;;  %v533_v1 = vpop.f32.mrb[7].mxu0  ;;  %v597_v2 = vpop.f32.mrb[7].mxu1  ;;  %v785_v5 = vmax.f32 %v753_v55, 0.0  ;;  %v801_v6 = vmax.f32 %v769_v56, 0.0 }
 0x106   : > { %v752_v3 = vadd.f32 %v1501_v24, %v533_v1  ;;  %v768_v4 = vadd.f32 %v1501_v24, %v597_v2  ;;  %v783_v9 = vmax.f32 %v751_v59, 0.0  ;;  %v799_v10 = vmax.f32 %v767_v60, 0.0 }
 0x107   : > { %v786_v7 = vmax.f32 %v754_v63, 0.0  ;;  %v802_v8 = vmax.f32 %v770_v0, 0.0 }
 0x108   : > { %v784_v11 = vmax.f32 %v752_v3, 0.0  ;;  %v800_v12 = vmax.f32 %v768_v4, 0.0 }
 0x109   : > { %v1173_v13 = vpack.c.bf16 %v786_v7, %v785_v5  ;;  %v1213_v14 = vpack.c.bf16 %v802_v8, %v801_v6 }
 0x10a   : > { %v1168_v15 = vpack.c.bf16 %v784_v11, %v783_v9  ;;  %v1208_v16 = vpack.c.bf16 %v800_v12, %v799_v10  ;;  %v1300_v17 = vpop.f32.mrb[8].mxu0  ;;  %v1316_v18 = vpop.f32.mrb[8].mxu1 }
 0x10b   : > { %1237 = vst [vmem:[%s1516_s17 + $0x18] sm:$0xff] %v1173_v13   ;;  %1245 = vst [vmem:[%s1516_s17 + $0x58] sm:$0xff] %v1213_v14   ;;  %v757_v19 = vadd.f32 %v1300_v17, %v1501_v24  ;;  %v773_v20 = vadd.f32 %v1316_v18, %v1501_v24  ;;  %v546_v21 = vpop.f32.mrb[9].mxu0  ;;  %v610_v22 = vpop.f32.mrb[9].mxu1 }
 0x10c   : > { %1236 = vst [vmem:[%s1516_s17 + $0x10] sm:$0xff] %v1168_v15   ;;  %1244 = vst [vmem:[%s1516_s17 + $0x50] sm:$0xff] %v1208_v16   ;;  %v755_v23 = vadd.f32 %v1501_v24, %v546_v21  ;;  %v771_v25 = vadd.f32 %v1501_v24, %v610_v22  ;;  %v1301_v26 = vpop.f32.mrb[10].mxu0  ;;  %v1317_v27 = vpop.f32.mrb[10].mxu1 }
 0x10d   : > { %v758_v28 = vadd.f32 %v1301_v26, %v1501_v24  ;;  %v774_v29 = vadd.f32 %v1317_v27, %v1501_v24  ;;  %v549_v30 = vpop.f32.mrb[11].mxu0  ;;  %v613_v31 = vpop.f32.mrb[11].mxu1  ;;  %v789_v34 = vmax.f32 %v757_v19, 0.0  ;;  %v805_v35 = vmax.f32 %v773_v20, 0.0 }
 0x10e   : > { %v756_v32 = vadd.f32 %v1501_v24, %v549_v30  ;;  %v772_v33 = vadd.f32 %v1501_v24, %v613_v31  ;;  %v787_v38 = vmax.f32 %v755_v23, 0.0  ;;  %v803_v39 = vmax.f32 %v771_v25, 0.0 }
 0x10f   : > { %v790_v36 = vmax.f32 %v758_v28, 0.0  ;;  %v806_v37 = vmax.f32 %v774_v29, 0.0 }
 0x110   : > { %v788_v40 = vmax.f32 %v756_v32, 0.0  ;;  %v804_v41 = vmax.f32 %v772_v33, 0.0 }
 0x111   : > { %v1183_v42 = vpack.c.bf16 %v790_v36, %v789_v34  ;;  %v1223_v43 = vpack.c.bf16 %v806_v37, %v805_v35 }
 0x112   : > { %v1178_v44 = vpack.c.bf16 %v788_v40, %v787_v38  ;;  %v1218_v45 = vpack.c.bf16 %v804_v41, %v803_v39  ;;  %v1304_v46 = vpop.f32.mrb[12].mxu0  ;;  %v1320_v47 = vpop.f32.mrb[12].mxu1 }
 0x113   : > { %1239 = vst [vmem:[%s1516_s17 + $0x28] sm:$0xff] %v1183_v42   ;;  %1247 = vst [vmem:[%s1516_s17 + $0x68] sm:$0xff] %v1223_v43   ;;  %v761_v48 = vadd.f32 %v1304_v46, %v1501_v24  ;;  %v777_v49 = vadd.f32 %v1320_v47, %v1501_v24  ;;  %v562_v50 = vpop.f32.mrb[13].mxu0  ;;  %v626_v51 = vpop.f32.mrb[13].mxu1 }
 0x114   : > { %1238 = vst [vmem:[%s1516_s17 + $0x20] sm:$0xff] %v1178_v44   ;;  %1246 = vst [vmem:[%s1516_s17 + $0x60] sm:$0xff] %v1218_v45   ;;  %v759_v52 = vadd.f32 %v1501_v24, %v562_v50  ;;  %v775_v53 = vadd.f32 %v1501_v24, %v626_v51  ;;  %v1305_v54 = vpop.f32.mrb[14].mxu0  ;;  %v1321_v55 = vpop.f32.mrb[14].mxu1 }
 0x115   : > { %v762_v56 = vadd.f32 %v1305_v54, %v1501_v24  ;;  %v778_v57 = vadd.f32 %v1321_v55, %v1501_v24  ;;  %v565_v58 = vpop.f32.mrb[15].mxu0  ;;  %v629_v59 = vpop.f32.mrb[15].mxu1  ;;  %v793_v62 = vmax.f32 %v761_v48, 0.0  ;;  %v809_v63 = vmax.f32 %v777_v49, 0.0 }
 0x116   : > { %v760_v60 = vadd.f32 %v1501_v24, %v565_v58  ;;  %v776_v61 = vadd.f32 %v1501_v24, %v629_v59  ;;  %v791_v2 = vmax.f32 %v759_v52, 0.0  ;;  %v807_v3 = vmax.f32 %v775_v53, 0.0 }
 0x117   : > { %v794_v0 = vmax.f32 %v762_v56, 0.0  ;;  %v810_v1 = vmax.f32 %v778_v57, 0.0 }
 0x118   : > { %v792_v4 = vmax.f32 %v760_v60, 0.0  ;;  %v808_v5 = vmax.f32 %v776_v61, 0.0 }
 0x119   : > { %v1193_v6 = vpack.c.bf16 %v794_v0, %v793_v62  ;;  %v1233_v7 = vpack.c.bf16 %v810_v1, %v809_v63 }
 0x11a   : > { %v1188_v8 = vpack.c.bf16 %v792_v4, %v791_v2  ;;  %v1228_v9 = vpack.c.bf16 %v808_v5, %v807_v3 }
 0x11b   : > { %1241 = vst [vmem:[%s1516_s17 + $0x38] sm:$0xff] %v1193_v6   ;;  %1249 = vst [vmem:[%s1516_s17 + $0x78] sm:$0xff] %v1233_v7  }
 0x11c   : > { %1240 = vst [vmem:[%s1516_s17 + $0x30] sm:$0xff] %v1188_v8   ;;  %1248 = vst [vmem:[%s1516_s17 + $0x70] sm:$0xff] %v1228_v9  }
 0x11d PF: > { %s13_s14 = sadd.s32 1, %s1408_s14   ;;  %s1571_s12 = smov %s1404_s13 }
 0x11e   : > { %p10_p5 = scmp.ge.s32.totalorder %s13_s14, 4   ;;  %s1572_s13 = smov %s1574_s15 }
 0x120   :  { %12 = sbr.rel (!%p10_p5) target bundleno = 2 (0x2), region = 73 }

// kernel: _backbone_forward.6
= control target key start
LH: loop header
LB: loop body
LE: loop exit
PB: predicated region body
PF: predicated region fallthrough
CT: control target
= control target key end

     0   :  { %s477_s1 = inlined_call_operand.vmem [shape: bf16[256,128], index: 1, kind: input, shape index: {}]   ;;  %s478_s0 = inlined_call_operand.vmem [shape: bf16[32,256], index: 0, kind: input, shape index: {}]   ;;  %s479_s2 = inlined_call_operand.vmem [shape: f32[1,128], index: 2, kind: input, shape index: {}]   ;;  %s480_s3 = inlined_call_operand.vmem [shape: bf16[32,128], index: 3, kind: output, shape index: {}]  }
   0x1   :  { %v366_v0 = vld [vmem:[%s477_s1 + $0x40] sm:$0xff]   ;;  %v368_v2 = vld [vmem:[%s477_s1 + $0x48] sm:$0xff]   ;;  %v370_v4 = vld [vmem:[%s477_s1 + $0x50] sm:$0xff]  }
   0x2   :  { %v367_v1 = vld [vmem:[%s477_s1] sm:$0xff]   ;;  %322 = vmatprep.subr.bf16.mxu0 %v366_v0  ;;  %350 = vmatprep.subr.bf16.mxu1 %v366_v0  ;;  %v369_v3 = vld [vmem:[%s477_s1 + $0x8] sm:$0xff]   ;;  %v371_v5 = vld [vmem:[%s477_s1 + $0x10] sm:$0xff]  }
   0x3   :  { %323 = vmatpush3.bf16.msra.mxu0 %v367_v1  ;;  %358 = vmatpush3.bf16.msra.mxu1 %v367_v1  ;;  %v372_v6 = vld [vmem:[%s477_s1 + $0x58] sm:$0xff]   ;;  %v374_v8 = vld [vmem:[%s477_s1 + $0x60] sm:$0xff]   ;;  %v376_v10 = vld [vmem:[%s477_s1 + $0x68] sm:$0xff]  }
   0x4   :  { %324 = vmatprep.subr.bf16.mxu0 %v368_v2  ;;  %351 = vmatprep.subr.bf16.mxu1 %v368_v2  ;;  %v373_v7 = vld [vmem:[%s477_s1 + $0x18] sm:$0xff]   ;;  %v375_v9 = vld [vmem:[%s477_s1 + $0x20] sm:$0xff]   ;;  %v377_v13 = vld [vmem:[%s477_s1 + $0x28] sm:$0xff]  }
   0x5   :  { %v384_v11 = vld [vmem:[%s478_s0 + $0x4] ss:$8 sps:$4 sm:$0xff]   ;;  %v387_v12 = vld [vmem:[%s478_s0 + $0x14] ss:$8 sps:$4 sm:$0xff]   ;;  %v382_v18 = vld [vmem:[%s478_s0] ss:$8 sps:$4 sm:$0xff]  }
   0x6   :  { %v378_v14 = vld [vmem:[%s477_s1 + $0x70] sm:$0xff]   ;;  %211 = vmatprep.mubr.bf16.mxu0 %v384_v11  ;;  %219 = vmatprep.mubr.bf16.mxu1 %v387_v12  ;;  %v380_v16 = vld [vmem:[%s477_s1 + $0x78] sm:$0xff]   ;;  %v302_v23 = vld [vmem:[%s479_s2] ss:$0 sm:$0xff] }
   0x7   :  { %325 = vmatpush3.bf16.msra.mxu0 %v369_v3  ;;  %359 = vmatpush3.bf16.msra.mxu1 %v369_v3  ;;  %v379_v15 = vld [vmem:[%s477_s1 + $0x30] sm:$0xff]   ;;  %v381_v17 = vld [vmem:[%s477_s1 + $0x38] sm:$0xff]  }
   0x8   :  { %326 = vmatprep.subr.bf16.mxu0 %v370_v4  ;;  %352 = vmatprep.subr.bf16.mxu1 %v370_v4  ;;  %v385_v19 = vld [vmem:[%s478_s0 + $0x10] ss:$8 sps:$4 sm:$0xff]  }
   0xb   :  { %327 = vmatpush3.bf16.msra.mxu0 %v371_v5  ;;  %360 = vmatpush3.bf16.msra.mxu1 %v371_v5 }
   0xc   :  { %328 = vmatprep.subr.bf16.mxu0 %v372_v6  ;;  %353 = vmatprep.subr.bf16.mxu1 %v372_v6 }
   0xf   :  { %329 = vmatpush3.bf16.msra.mxu0 %v373_v7  ;;  %361 = vmatpush3.bf16.msra.mxu1 %v373_v7 }
  0x10   :  { %330 = vmatprep.subr.bf16.mxu0 %v374_v8  ;;  %354 = vmatprep.subr.bf16.mxu1 %v374_v8 }
  0x13   :  { %331 = vmatpush3.bf16.msra.mxu0 %v375_v9  ;;  %362 = vmatpush3.bf16.msra.mxu1 %v375_v9 }
  0x14   :  { %332 = vmatprep.subr.bf16.mxu0 %v376_v10  ;;  %355 = vmatprep.subr.bf16.mxu1 %v376_v10 }
  0x17   :  { %333 = vmatpush3.bf16.msra.mxu0 %v377_v13  ;;  %363 = vmatpush3.bf16.msra.mxu1 %v377_v13 }
  0x18   :  { %334 = vmatprep.subr.bf16.mxu0 %v378_v14  ;;  %356 = vmatprep.subr.bf16.mxu1 %v378_v14 }
  0x1b   :  { %335 = vmatpush3.bf16.msra.mxu0 %v379_v15  ;;  %364 = vmatpush3.bf16.msra.mxu1 %v379_v15 }
  0x1c   :  { %336 = vmatprep.subr.bf16.mxu0 %v380_v16  ;;  %357 = vmatprep.subr.bf16.mxu1 %v380_v16 }
  0x1f   :  { %337 = vmatpush3.bf16.msra.mxu0 %v381_v17  ;;  %365 = vmatpush3.bf16.msra.mxu1 %v381_v17 }
  0x22   :  { %212 = vmatmul.mubr.bf16.vlgmr.msra.gmra.mrb[0].mxu0 %v382_v18  ;;  %220 = vmatmul.mubr.bf16.vlgmr.msra.gmra.mrb[0].mxu1 %v385_v19 }
  0xf5   :  { %v338_v20 = vpop.f32.mrb[0].mxu0  ;;  %v344_v21 = vpop.f32.mrb[0].mxu1 }
  0xf6   :  { %v339_v22 = vpop.f32.mrb[1].mxu0  ;;  %v345_v24 = vpop.f32.mrb[1].mxu1 }
  0xf7   :  { %v340_v25 = vadd.f32 %v339_v22, %v338_v20  ;;  %v346_v26 = vadd.f32 %v345_v24, %v344_v21  ;;  %v341_v27 = vpop.f32.mrb[2].mxu0  ;;  %v347_v28 = vpop.f32.mrb[2].mxu1 }
  0xf8   :  { %v342_v29 = vpop.f32.mrb[3].mxu0  ;;  %v348_v30 = vpop.f32.mrb[3].mxu1 }
  0xf9   :  { %v250_v31 = vadd.f32 %v340_v25, %v302_v23  ;;  %v252_v32 = vadd.f32 %v346_v26, %v302_v23  ;;  %v343_v33 = vadd.f32 %v342_v29, %v341_v27  ;;  %v349_v34 = vadd.f32 %v348_v30, %v347_v28 }
  0xfb   :  { %v251_v35 = vadd.f32 %v343_v33, %v302_v23  ;;  %v253_v36 = vadd.f32 %v349_v34, %v302_v23  ;;  %v254_v37 = vmax.f32 %v250_v31, 0.0  ;;  %v256_v38 = vmax.f32 %v252_v32, 0.0 }
  0xfd   :  { %v255_v39 = vmax.f32 %v251_v35, 0.0  ;;  %v257_v40 = vmax.f32 %v253_v36, 0.0 }
  0xff   :  { %v314_v41 = vpack.c.bf16 %v255_v39, %v254_v37  ;;  %v319_v42 = vpack.c.bf16 %v257_v40, %v256_v38 }
 0x101   :  { %315 = vst [vmem:[%s480_s3] sm:$0xff] %v314_v41   ;;  %321 = vst [vmem:[%s480_s3 + $0x8] sm:$0xff] %v319_v42  }

// kernel: _backbone_forward.7
= control target key start
LH: loop header
LB: loop body
LE: loop exit
PB: predicated region body
PF: predicated region fallthrough
CT: control target
= control target key end

     0   :  { %v435_v1 = vmov 0.0   ;;  %vm436_vm0 = vmmov 0   ;;  %s541_s1 = inlined_call_operand.vmem [shape: bf16[384,128], index: 1, kind: input, shape index: {}]   ;;  %s542_s0 = inlined_call_operand.vmem [shape: bf16[8,384], index: 0, kind: input, shape index: {}]   ;;  %s543_s2 = inlined_call_operand.vmem [shape: f32[1,128], index: 2, kind: input, shape index: {}]   ;;  %s544_s3 = inlined_call_operand.vmem [shape: bf16[8,128], index: 3, kind: output, shape index: {}]  }
   0x1   :  { %v408_v0 = vld [vmem:[%s541_s1 + $0x40] sm:$0xff]   ;;  %386 = vmatprep.subr.bf16.mxu1 %v435_v1  ;;  %402 = vmatprep.mubr.msk.bf16.mxu1 %vm436_vm0, %v435_v1  ;;  %v411_v4 = vld [vmem:[%s541_s1 + $0x48] sm:$0xff]   ;;  %v414_v7 = vld [vmem:[%s541_s1 + $0x50] sm:$0xff]  }
   0x2   :  { %v409_v2 = vld [vmem:[%s541_s1] sm:$0xff]   ;;  %355 = vmatprep.subr.bf16.mxu0 %v408_v0  ;;  %v412_v5 = vld [vmem:[%s541_s1 + $0x8] sm:$0xff]   ;;  %v415_v8 = vld [vmem:[%s541_s1 + $0x10] sm:$0xff]  }
   0x3   :  { %v410_v3 = vld [vmem:[%s541_s1 + $0x80] sm:$0xff]   ;;  %356 = vmatpush3.bf16.msra.mxu0 %v409_v2  ;;  %v413_v6 = vld [vmem:[%s541_s1 + $0x88] sm:$0xff]   ;;  %v416_v9 = vld [vmem:[%s541_s1 + $0x90] sm:$0xff]  }
   0x4   :  { %387 = vmatpush3.bf16.msra.mxu1 %v410_v3  ;;  %357 = vmatprep.subr.bf16.mxu0 %v411_v4  ;;  %v417_v10 = vld [vmem:[%s541_s1 + $0x58] sm:$0xff]   ;;  %v420_v13 = vld [vmem:[%s541_s1 + $0x60] sm:$0xff]   ;;  %v423_v16 = vld [vmem:[%s541_s1 + $0x68] sm:$0xff]  }
   0x5   :  { %388 = vmatprep.subr.bf16.mxu1 %v435_v1  ;;  %v418_v11 = vld [vmem:[%s541_s1 + $0x18] sm:$0xff]   ;;  %v421_v14 = vld [vmem:[%s541_s1 + $0x20] sm:$0xff]   ;;  %v424_v17 = vld [vmem:[%s541_s1 + $0x28] sm:$0xff]  }
   0x6   :  { %v419_v12 = vld [vmem:[%s541_s1 + $0x98] sm:$0xff]   ;;  %v422_v15 = vld [vmem:[%s541_s1 + $0xa0] sm:$0xff]   ;;  %v425_v18 = vld [vmem:[%s541_s1 + $0xa8] sm:$0xff]  }
   0x7   :  { %358 = vmatpush3.bf16.msra.mxu0 %v412_v5  ;;  %v426_v19 = vld [vmem:[%s541_s1 + $0x70] sm:$0xff]   ;;  %v429_v22 = vld [vmem:[%s541_s1 + $0x78] sm:$0xff]   ;;  %v21_v23 = vld [vmem:[%s542_s0] sm:$0xff] }
   0x8   :  { %389 = vmatpush3.bf16.msra.mxu1 %v413_v6  ;;  %359 = vmatprep.subr.bf16.mxu0 %v414_v7  ;;  %v427_v20 = vld [vmem:[%s541_s1 + $0x30] sm:$0xff]   ;;  %v328_v24 = vcombine.high %v21_v23, %v21_v23  ;;  %v430_v25 = vld [vmem:[%s541_s1 + $0x38] sm:$0xff]   ;;  %v327_v27 = vcombine.low %v21_v23, %v21_v23  ;;  %v434_v28 = vld [vmem:[%s542_s0 + $0x8] ss:$0 sps:$4 sm:$0xff]  }
   0x9   :  { %390 = vmatprep.subr.bf16.mxu1 %v435_v1  ;;  %v428_v21 = vld [vmem:[%s541_s1 + $0xb0] sm:$0xff]   ;;  %v431_v26 = vld [vmem:[%s541_s1 + $0xb8] sm:$0xff]   ;;  %v354_v35 = vld [vmem:[%s543_s2] ss:$0 sm:$0xff] }
   0xa   :  { %258 = vmatprep.mubr.bf16.mxu0 %v328_v24 }
   0xb   :  { %360 = vmatpush3.bf16.msra.mxu0 %v415_v8 }
   0xc   :  { %391 = vmatpush3.bf16.msra.mxu1 %v416_v9  ;;  %361 = vmatprep.subr.bf16.mxu0 %v417_v10 }
   0xd   :  { %392 = vmatprep.subr.bf16.mxu1 %v435_v1 }
   0xf   :  { %362 = vmatpush3.bf16.msra.mxu0 %v418_v11 }
  0x10   :  { %393 = vmatpush3.bf16.msra.mxu1 %v419_v12  ;;  %363 = vmatprep.subr.bf16.mxu0 %v420_v13 }
  0x11   :  { %394 = vmatprep.subr.bf16.mxu1 %v435_v1 }
  0x13   :  { %364 = vmatpush3.bf16.msra.mxu0 %v421_v14 }
  0x14   :  { %395 = vmatpush3.bf16.msra.mxu1 %v422_v15  ;;  %365 = vmatprep.subr.bf16.mxu0 %v423_v16 }
  0x15   :  { %396 = vmatprep.subr.bf16.mxu1 %v435_v1 }
  0x17   :  { %366 = vmatpush3.bf16.msra.mxu0 %v424_v17 }
  0x18   :  { %397 = vmatpush3.bf16.msra.mxu1 %v425_v18  ;;  %367 = vmatprep.subr.bf16.mxu0 %v426_v19 }
  0x19   :  { %398 = vmatprep.subr.bf16.mxu1 %v435_v1 }
  0x1b   :  { %368 = vmatpush3.bf16.msra.mxu0 %v427_v20 }
  0x1c   :  { %399 = vmatpush3.bf16.msra.mxu1 %v428_v21  ;;  %369 = vmatprep.subr.bf16.mxu0 %v429_v22 }
  0x1d   :  { %400 = vmatprep.subr.bf16.mxu1 %v435_v1 }
  0x1f   :  { %370 = vmatpush3.bf16.msra.mxu0 %v430_v25 }
  0x20   :  { %401 = vmatpush3.bf16.msra.mxu1 %v431_v26 }
  0x22   :  { %259 = vmatmul.mubr.bf16.vlgmr.msra.gmra.mrb[0].mxu0 %v327_v27 }
  0x23   :  { %403 = vmatmul.mubr.bf16.vlgmr.msra.gmra.mrb[0].mxu1 %v434_v28 }
  0xf5   :  { %v371_v29 = vpop.f32.mrb[0].mxu0 }
  0xf6   :  { %v300_v30 = vpop.f32.mrb[0].mxu1  ;;  %v372_v31 = vpop.f32.mrb[1].mxu0 }
  0xf7   :  { %v373_v32 = vadd.f32 %v372_v31, %v371_v29  ;;  %v404_v33 = vpop.f32.mrb[1].mxu1  ;;  %v374_v34 = vpop.f32.mrb[2].mxu0 }
  0xf8   :  { %v303_v36 = vpop.f32.mrb[2].mxu1  ;;  %v375_v37 = vpop.f32.mrb[3].mxu0 }
  0xf9   :  { %v301_v38 = vadd.f32 %v373_v32, %v300_v30  ;;  %v405_v39 = vpop.f32.mrb[3].mxu1 }
  0xfb   :  { %v319_v40 = vadd.f32 %v354_v35, %v301_v38 }
  0xfd   :  { %v320_v41 = vmax.f32 %v319_v40, 0.0 }
  0xff   :  { %v321_v42 = vpack.c.bf16 %v320_v41, %v320_v41 }
 0x101   :  { %322 = vst [vmem:[%s544_s3] sm:$0xf] %v321_v42 }

</bundles_post_ra>
